<compile_context>
chip_gen: v5e
topology: v5e:2x2
jax: 0.10.0
libtpu: 0.0.40
codegen_flags: <defaults>
</compile_context>

<pallas_src>
import functools

import jax
import jax.numpy as jnp
from jax.experimental import pallas as pl
from jax.experimental.pallas import tpu as pltpu


def _round_up(v: int, m: int) -> int:
    return ((v + m - 1) // m) * m


def _fit_div(dim: int, target: int) -> int:
    """Largest power-of-two multiple of 128 <= target that divides dim (dim is a 128 multiple)."""
    t = min(target, dim)
    while t > 128 and dim % t != 0:
        t //= 2
    return t


def _pick_tiles(n128: int):
    """Row tile (tm) and reduction tile (tk); both divide n128.  tk grows before tm (v5e)."""
    tm = _fit_div(n128, 512 if n128 >= 4096 else 256 if n128 >= 1024 else 128)
    tk = _fit_div(n128, 2048 if n128 >= 8192 else 1024 if n128 >= 2048 else 512)
    # v7x has 2 TensorCores: make sure the "parallel" row axis has at least 2 tiles.
    while n128 // tm < 2 and tm > 8:
        tm //= 2
    return tm, tk


def _vmem_ceiling() -> int:
    """Per-generation VMEM budget (leave headroom under the physical capacity)."""
    try:
        cap = getattr(pltpu.get_tpu_info(), "vmem_capacity_bytes", None)
        if cap:
            return int(min(cap * 3 // 4, 100 << 20))   # ~48 MiB on v7x, ~96 MiB on v5e/v6e
    except Exception:
        pass
    return 48 << 20                                    # safe fallback (fits v7x's 64 MiB)


def _vmem_limit(need_bytes: int, ceiling: int) -> int:
    """Limit derived from the actual working set (x2 margin), clamped to the per-chip budget."""
    return int(min(max(2 * need_bytes, 16 << 20), ceiling))


def _pad_cast(a, shape, dtype):
    """Cast / zero-pad only when needed (avoid an extra full-array rewrite pass)."""
    if a.dtype != dtype:
        a = a.astype(dtype)
    pads = [(0, s - d) for s, d in zip(shape, a.shape)]
    if any(p[1] for p in pads):
        a = jnp.pad(a, pads)
    return a


# --------------------------------------------------------------------------------------
# Kernel 1: fused, K-tiled input projection  xw = x @ [W_rel | W_root]
#   grid = (row tiles, cp tiles); acc_ref is an f32 VMEM accumulator.
# --------------------------------------------------------------------------------------
def _proj_kernel(x_ref, w_ref, o_ref, acc_ref):
    k = pl.program_id(1)

    @pl.when(k == 0)
    def _():
        acc_ref[...] = jnp.zeros_like(acc_ref)

    acc_ref[...] += jnp.dot(x_ref[...], w_ref[...], preferred_element_type=jnp.float32)

    @pl.when(k == pl.num_programs(1) - 1)
    def _():
        o_ref[...] = acc_ref[...].astype(o_ref.dtype)


# --------------------------------------------------------------------------------------
# Kernel 2: tiled SpMM + epilogue (root term, bias, relu, decoder)
#   grid = (row tiles, K tiles); acc_ref is a per-row-tile f32 accumulator.
#   xr_ref is either the full resident projection (np_, hp) or a streamed K tile (tk, hp).
# --------------------------------------------------------------------------------------
def _gae_kernel(adj_ref, xr_ref, xroot_ref, b_rel_ref, w_dec_ref, b_dec_ref,
                out_ref, acc_ref):
    k = pl.program_id(1)
    tk = adj_ref.shape[1]

    @pl.when(k == 0)
    def _():
        # Fold root term + bias into the accumulator init (keeps the epilogue short).
        # NOTE: padded node rows see acc = b_rel here and produce relu(b_rel) @ W_dec + b_dec
        # garbage; those rows are sliced off in the wrapper (wasted work, not a bug).
        acc_ref[...] = xroot_ref[...].astype(jnp.float32) + b_rel_ref[...]

    if xr_ref.shape[0] == tk:                      # streamed: this step's K tile
        xr = xr_ref[...]
    else:                                          # resident: slice the K window in VMEM
        xr = xr_ref[pl.ds(pl.multiple_of(k * tk, tk), tk), :]

    # Neighborhood aggregation in projected space: acc += adj_tile @ (x @ W_rel)[k-tile]
    acc_ref[...] += jnp.dot(adj_ref[...], xr, preferred_element_type=jnp.float32)

    @pl.when(k == pl.num_programs(1) - 1)
    def _():
        z = jnp.maximum(acc_ref[...], 0.0)
        out = jnp.dot(z.astype(w_dec_ref.dtype), w_dec_ref[...],
                      preferred_element_type=jnp.float32) + b_dec_ref[...]
        out_ref[...] = out.astype(out_ref.dtype)


@functools.partial(jax.jit, static_argnames=("mxu_dtype",))
def gae_graphconv(adj, x, w_rel, w_root, b_rel, w_dec, b_dec,
                  *, mxu_dtype=jnp.bfloat16):
    n = adj.shape[0]
    c_in = x.shape[1]
    hidden = w_rel.shape[1]
    c_out = w_dec.shape[1]

    np_ = _round_up(n, 128)             # minimal node padding; tiles divide np_ exactly
    tm, tk = _pick_tiles(np_)
    hp = _round_up(hidden, 128)         # lane-dense hidden dim (do NOT pad to 256: mem-bound)
    cp = _round_up(c_in, 128)
    cop = _round_up(c_out, 128)
    # TODO(synk): for very large graphs the decoder output dim (cop == N) should get its own
    # grid axis / kernel; kept fused in the epilogue here (fine for moderate N).

    f32 = jnp.float32
    dbytes = jnp.dtype(mxu_dtype).itemsize
    ceiling = _vmem_ceiling()

    # --- pad / cast only when needed -----------------------------------------------------
    adj_p = _pad_cast(adj, (np_, np_), mxu_dtype)
    x_p = _pad_cast(x, (np_, cp), mxu_dtype)
    w_cat = jnp.concatenate(
        [jnp.pad(w_rel.astype(f32), ((0, cp - c_in), (0, hp - hidden))),
         jnp.pad(w_root.astype(f32), ((0, cp - c_in), (0, hp - hidden)))],
        axis=1).astype(mxu_dtype)                                   # (cp, 2*hp)
    b_rel_p = jnp.pad(b_rel.reshape(1, -1).astype(f32), ((0, 0), (0, hp - hidden)))
    w_dec_p = _pad_cast(w_dec, (hp, cop), mxu_dtype)
    b_dec_p = jnp.pad(b_dec.reshape(1, -1).astype(f32), ((0, 0), (0, cop - c_out)))

    # --- projection: xw = x @ [W_rel | W_root]  (K-tiled so c_in == N never blows VMEM) ----
    tkc = _fit_div(cp, 512)
    proj_need = (2 * (tm * tkc + tkc * 2 * hp + tm * 2 * hp) * dbytes + tm * 2 * hp * 4)
    xw = pl.pallas_call(
        _proj_kernel,
        out_shape=jax.ShapeDtypeStruct((np_, 2 * hp), mxu_dtype),
        grid=(np_ // tm, cp // tkc),
        in_specs=[pl.BlockSpec((tm, tkc), lambda i, k: (i, k)),
                  pl.BlockSpec((tkc, 2 * hp), lambda i, k: (k, 0))],
        out_specs=pl.BlockSpec((tm, 2 * hp), lambda i, k: (i, 0)),
        scratch_shapes=[pltpu.VMEM((tm, 2 * hp), jnp.float32)],
        compiler_params=pltpu.CompilerParams(
            dimension_semantics=("parallel", "arbitrary"),
            vmem_limit_bytes=_vmem_limit(proj_need, ceiling)),
        cost_estimate=pl.CostEstimate(
            flops=2 * np_ * cp * 2 * hp, transcendentals=0,
            bytes_accessed=(np_ * cp + cp * 2 * hp + np_ * 2 * hp) * dbytes),
    )(x_p, w_cat)

    # --- main tiled SpMM + fused epilogue --------------------------------------------------
    xr_resident = (2 * np_ * hp * dbytes) <= ceiling // 2
    if xr_resident:
        xr_spec = pl.BlockSpec((np_, hp), lambda i, k: (0, 0))     # single DMA, stays in VMEM
        xr_bytes = np_ * hp * dbytes
    else:
        xr_spec = pl.BlockSpec((tk, hp), lambda i, k: (k, 0))      # streamed per K tile
        xr_bytes = (np_ // tm) * np_ * hp * dbytes

    n_steps = (np_ // tm) * (np_ // tk)
    if n_steps >= 4:
        adj_spec = pl.BlockSpec((tm, tk), lambda i, k: (i, k),
                                pipeline_mode=pl.Buffered(3))      # deeper buffering on the
        adj_bufs = 3                                               # binding HBM stream
    else:
        adj_spec = pl.BlockSpec((tm, tk), lambda i, k: (i, k))
        adj_bufs = 2

    main_need = (adj_bufs * tm * tk * dbytes
                 + (2 * np_ * hp * dbytes if xr_resident else 2 * tk * hp * dbytes)
                 + 2 * tm * hp * dbytes            # xroot
                 + 2 * (hp + cop) * 4              # biases (f32)
                 + 2 * hp * cop * dbytes           # decoder weight (resident)
                 + 2 * tm * cop * 4                # output tile (f32)
                 + tm * hp * 4)                    # accumulator scratch
    main_flops = 2 * np_ * np_ * hp + 2 * np_ * hp * cop
    main_bytes = (np_ * np_ * dbytes + xr_bytes + np_ * hp * dbytes
                  + hp * cop * dbytes + (hp + cop) * 4 + np_ * cop * 4)

    out_p = pl.pallas_call(
        _gae_kernel,
        out_shape=jax.ShapeDtypeStruct((np_, cop), jnp.float32),
        grid=(np_ // tm, np_ // tk),
        in_specs=[
            adj_spec,                                      # adjacency tile (binding stream)
            xr_spec,                                       # xr    = xw[:, :hp]
            pl.BlockSpec((tm, hp), lambda i, k: (i, 1)),   # xroot = xw[:, hp:]  (row tile)
            pl.BlockSpec((1, hp), lambda i, k: (0, 0)),    # b_rel   (resident)
            pl.BlockSpec((hp, cop), lambda i, k: (0, 0)),  # W_dec   (resident)
            pl.BlockSpec((1, cop), lambda i, k: (0, 0)),   # b_dec   (resident)
        ],
        out_specs=pl.BlockSpec((tm, cop), lambda i, k: (i, 0)),
        scratch_shapes=[pltpu.VMEM((tm, hp), jnp.float32)],
        compiler_params=pltpu.CompilerParams(
            dimension_semantics=("parallel", "arbitrary"),
            vmem_limit_bytes=_vmem_limit(main_need, ceiling)),
        cost_estimate=pl.CostEstimate(flops=main_flops, transcendentals=0,
                                      bytes_accessed=main_bytes),
    )(adj_p, xw, xw, b_rel_p, w_dec_p, b_dec_p)

    return out_p[:n, :c_out]


def reference(adj, x, w_rel, w_root, b_rel, w_dec, b_dec):
    z = jnp.maximum((adj @ x) @ w_rel + b_rel + x @ w_root, 0.0)
    return z @ w_dec + b_dec


def _make_demo(num_nodes: int, hidden: int, seed: int):
    key = jax.random.PRNGKey(seed)
    k_edges, k_w, k_rel, k_root, k_brel, k_dec, k_bdec = jax.random.split(key, 7)

    num_edges = 3 * num_nodes
    src = jnp.concatenate([
        jnp.arange(num_nodes, dtype=jnp.int32),
        jax.random.randint(k_edges, (num_edges - num_nodes,), 0, num_nodes, dtype=jnp.int32)])
    dst = jnp.concatenate([
        (jnp.arange(num_nodes, dtype=jnp.int32) + 1) % num_nodes,
        jax.random.randint(jax.random.fold_in(k_edges, 1),
                           (num_edges - num_nodes,), 0, num_nodes, dtype=jnp.int32)])
    edge_weight = jax.random.uniform(k_w, (num_edges,), dtype=jnp.float32)

    # Glue: dense adjacency adj[dst, src] += w  (scatter-add over the edge list).
    # TODO(synk): a CSR / segment-gather Pallas kernel would avoid the O(N^2) dense adjacency
    # for very large graphs; out of scope for this forward pass.
    adj = jnp.zeros((num_nodes, num_nodes), jnp.float32).at[dst, src].add(edge_weight)

    x = jnp.eye(num_nodes, dtype=jnp.float32)          # data.x = torch.eye(N), as in the script
    se = 1.0 / jnp.sqrt(jnp.float32(num_nodes))
    sd = 1.0 / jnp.sqrt(jnp.float32(hidden))
    w_rel = jax.random.uniform(k_rel, (num_nodes, hidden), jnp.float32, -se, se)
    w_root = jax.random.uniform(k_root, (num_nodes, hidden), jnp.float32, -se, se)
    b_rel = jax.random.uniform(k_brel, (1, hidden), jnp.float32, -se, se)
    w_dec = jax.random.uniform(k_dec, (hidden, num_nodes), jnp.float32, -sd, sd)
    b_dec = jax.random.uniform(k_bdec, (1, num_nodes), jnp.float32, -sd, sd)
    return adj, x, w_rel, w_root, b_rel, w_dec, b_dec


if __name__ == "__main__":
    # (a) tiny graph, f32 MXU path -> tight check against the pure-JAX reference.
    args_a = _make_demo(num_nodes=48, hidden=40, seed=0)
    out_a = jax.block_until_ready(gae_graphconv(*args_a, mxu_dtype=jnp.float32))
    ref_a = reference(*args_a)
    assert out_a.shape == (48, 48)
    assert jnp.allclose(out_a, ref_a, rtol=1e-4, atol=1e-4), "f32 mismatch vs reference"

    # (b) medium graph (hidden=200 like the original script), default bf16 path -- exercises
    #     multi-K accumulation, resident xr, Buffered(3) adj stream, K-tiled projection.
    args_b = _make_demo(num_nodes=640, hidden=200, seed=0)
    out_b = jax.block_until_ready(gae_graphconv(*args_b))
    ref_b = reference(*args_b)
    assert out_b.shape == (640, 640)
    assert jnp.allclose(out_b, ref_b, rtol=2e-2, atol=2e-2), "bf16 mismatch vs reference"

    print("KERNEL_OK")
</pallas_src>

<mosaic_0001>
module attributes {stable_mosaic.version = 11 : i64} {
  func.func @_gae_kernel(%arg0: i32, %arg1: i32, %arg2: memref<64x128xf32, #tpu.memory_space<vmem>>, %arg3: memref<128x128xf32, #tpu.memory_space<vmem>>, %arg4: memref<64x128xf32, #tpu.memory_space<vmem>>, %arg5: memref<1x128xf32, #tpu.memory_space<vmem>>, %arg6: memref<128x128xf32, #tpu.memory_space<vmem>>, %arg7: memref<1x128xf32, #tpu.memory_space<vmem>>, %arg8: memref<64x128xf32, #tpu.memory_space<vmem>>, %arg9: memref<64x128xf32, #tpu.memory_space<vmem>>) attributes {dimension_semantics = [#tpu.dimension_semantics<parallel>, #tpu.dimension_semantics<arbitrary>], iteration_bounds = array<i64: 2, 1>, scalar_prefetch = 0 : i64, scratch_operands = 1 : i64, tpu.core_type = #tpu.core_type<tc>, window_params = [{transform_indices = @transform_0, window_bounds = array<i64: 64, 128>}, {transform_indices = @transform_1, window_bounds = array<i64: 128, 128>}, {transform_indices = @transform_2, window_bounds = array<i64: 64, 128>}, {pipeline_mode = #tpu.pipeline_mode<synchronous>, transform_indices = @transform_3, window_bounds = array<i64: 1, 128>}, {pipeline_mode = #tpu.pipeline_mode<synchronous>, transform_indices = @transform_4, window_bounds = array<i64: 128, 128>}, {pipeline_mode = #tpu.pipeline_mode<synchronous>, transform_indices = @transform_5, window_bounds = array<i64: 1, 128>}, {transform_indices = @transform_6, window_bounds = array<i64: 64, 128>}]} {
    %c0_i32 = arith.constant 0 : i32
    %0 = arith.cmpi eq, %arg1, %c0_i32 : i32
    %1 = arith.extui %0 : i1 to i32
    %c0_i32_0 = arith.constant 0 : i32
    %2 = arith.cmpi ne, %1, %c0_i32_0 : i32
    scf.if %2 {
      %c0_10 = arith.constant 0 : index
      %c0_11 = arith.constant 0 : index
      %12 = vector.load %arg4[%c0_10, %c0_11] : memref<64x128xf32, #tpu.memory_space<vmem>>, vector<64x128xf32>
      %c0_12 = arith.constant 0 : index
      %c0_13 = arith.constant 0 : index
      %13 = vector.load %arg5[%c0_12, %c0_13] : memref<1x128xf32, #tpu.memory_space<vmem>>, vector<1x128xf32>
      %14 = vector.broadcast %13 : vector<1x128xf32> to vector<64x128xf32>
      %15 = arith.addf %12, %14 : vector<64x128xf32>
      %c0_14 = arith.constant 0 : index
      %c0_15 = arith.constant 0 : index
      %16 = vector.load %arg9[%c0_14, %c0_15] : memref<64x128xf32, #tpu.memory_space<vmem>>, vector<64x128xf32>
      tpu.vector_store %arg9[%c0_14, %c0_15], %15 {strides = array<i32>} : memref<64x128xf32, #tpu.memory_space<vmem>>, vector<64x128xf32>,
    } else {
    }
    %c0 = arith.constant 0 : index
    %c0_1 = arith.constant 0 : index
    %3 = vector.load %arg3[%c0, %c0_1] : memref<128x128xf32, #tpu.memory_space<vmem>>, vector<128x128xf32>
    %c0_2 = arith.constant 0 : index
    %c0_3 = arith.constant 0 : index
    %4 = vector.load %arg9[%c0_2, %c0_3] : memref<64x128xf32, #tpu.memory_space<vmem>>, vector<64x128xf32>
    %c0_4 = arith.constant 0 : index
    %c0_5 = arith.constant 0 : index
    %5 = vector.load %arg2[%c0_4, %c0_5] : memref<64x128xf32, #tpu.memory_space<vmem>>, vector<64x128xf32>
    %cst = arith.constant dense<0.000000e+00> : vector<64x128xf32>
    %6 = tpu.matmul %5, %3, %cst {dimension_numbers = #tpu.dot_dimension_numbers<[1], [0], [0], [1], [0, 0, 1, 1], [], []>} : vector<64x128xf32>, vector<128x128xf32>, vector<64x128xf32> -> vector<64x128xf32>
    %7 = arith.addf %4, %6 : vector<64x128xf32>
    %c0_6 = arith.constant 0 : index
    %c0_7 = arith.constant 0 : index
    %8 = vector.load %arg9[%c0_6, %c0_7] : memref<64x128xf32, #tpu.memory_space<vmem>>, vector<64x128xf32>
    tpu.vector_store %arg9[%c0_6, %c0_7], %7 {strides = array<i32>} : memref<64x128xf32, #tpu.memory_space<vmem>>, vector<64x128xf32>,
    %c0_i32_8 = arith.constant 0 : i32
    %9 = arith.cmpi eq, %arg1, %c0_i32_8 : i32
    %10 = arith.extui %9 : i1 to i32
    %c0_i32_9 = arith.constant 0 : i32
    %11 = arith.cmpi ne, %10, %c0_i32_9 : i32
    scf.if %11 {
      %c0_10 = arith.constant 0 : index
      %c0_11 = arith.constant 0 : index
      %12 = vector.load %arg9[%c0_10, %c0_11] : memref<64x128xf32, #tpu.memory_space<vmem>>, vector<64x128xf32>
      %cst_12 = arith.constant 0.000000e+00 : f32
      %13 = vector.broadcast %cst_12 : f32 to vector<64x128xf32>
      %14 = arith.maximumf %12, %13 : vector<64x128xf32>
      %c0_13 = arith.constant 0 : index
      %c0_14 = arith.constant 0 : index
      %15 = vector.load %arg6[%c0_13, %c0_14] : memref<128x128xf32, #tpu.memory_space<vmem>>, vector<128x128xf32>
      %cst_15 = arith.constant dense<0.000000e+00> : vector<64x128xf32>
      %16 = tpu.matmul %14, %15, %cst_15 {dimension_numbers = #tpu.dot_dimension_numbers<[1], [0], [0], [1], [0, 0, 1, 1], [], []>} : vector<64x128xf32>, vector<128x128xf32>, vector<64x128xf32> -> vector<64x128xf32>
      %c0_16 = arith.constant 0 : index
      %c0_17 = arith.constant 0 : index
      %17 = vector.load %arg7[%c0_16, %c0_17] : memref<1x128xf32, #tpu.memory_space<vmem>>, vector<1x128xf32>
      %18 = vector.broadcast %17 : vector<1x128xf32> to vector<64x128xf32>
      %19 = arith.addf %16, %18 : vector<64x128xf32>
      %c0_18 = arith.constant 0 : index
      %c0_19 = arith.constant 0 : index
      %20 = vector.load %arg8[%c0_18, %c0_19] : memref<64x128xf32, #tpu.memory_space<vmem>>, vector<64x128xf32>
      tpu.vector_store %arg8[%c0_18, %c0_19], %19 {strides = array<i32>} : memref<64x128xf32, #tpu.memory_space<vmem>>, vector<64x128xf32>,
    } else {
    }
    return
  }
  func.func @transform_0(%arg0: i32, %arg1: i32) -> (i32, i32) {
    %c0_i32 = arith.constant 0 : i32
    return %arg0, %arg1 : i32, i32
  }
  func.func @transform_1(%arg0: i32, %arg1: i32) -> (i32, i32) {
    %c0_i32 = arith.constant 0 : i32
    %c0_i32_0 = arith.constant 0 : i32
    %c0_i32_1 = arith.constant 0 : i32
    return %c0_i32, %c0_i32_0 : i32, i32
  }
  func.func @transform_2(%arg0: i32, %arg1: i32) -> (i32, i32) {
    %c1_i32 = arith.constant 1 : i32
    %c0_i32 = arith.constant 0 : i32
    return %arg0, %c1_i32 : i32, i32
  }
  func.func @transform_3(%arg0: i32, %arg1: i32) -> (i32, i32) {
    %c0_i32 = arith.constant 0 : i32
    %c0_i32_0 = arith.constant 0 : i32
    %c0_i32_1 = arith.constant 0 : i32
    return %c0_i32, %c0_i32_0 : i32, i32
  }
  func.func @transform_4(%arg0: i32, %arg1: i32) -> (i32, i32) {
    %c0_i32 = arith.constant 0 : i32
    %c0_i32_0 = arith.constant 0 : i32
    %c0_i32_1 = arith.constant 0 : i32
    return %c0_i32, %c0_i32_0 : i32, i32
  }
  func.func @transform_5(%arg0: i32, %arg1: i32) -> (i32, i32) {
    %c0_i32 = arith.constant 0 : i32
    %c0_i32_0 = arith.constant 0 : i32
    %c0_i32_1 = arith.constant 0 : i32
    return %c0_i32, %c0_i32_0 : i32, i32
  }
  func.func @transform_6(%arg0: i32, %arg1: i32) -> (i32, i32) {
    %c0_i32 = arith.constant 0 : i32
    %c0_i32_0 = arith.constant 0 : i32
    return %arg0, %c0_i32 : i32, i32
  }
}

module attributes {stable_mosaic.version = 11 : i64} {
  func.func @_proj_kernel(%arg0: i32, %arg1: i32, %arg2: memref<64x128xf32, #tpu.memory_space<vmem>>, %arg3: memref<128x256xf32, #tpu.memory_space<vmem>>, %arg4: memref<64x256xf32, #tpu.memory_space<vmem>>, %arg5: memref<64x256xf32, #tpu.memory_space<vmem>>) attributes {dimension_semantics = [#tpu.dimension_semantics<parallel>, #tpu.dimension_semantics<arbitrary>], iteration_bounds = array<i64: 2, 1>, scalar_prefetch = 0 : i64, scratch_operands = 1 : i64, tpu.core_type = #tpu.core_type<tc>, window_params = [{transform_indices = @transform_0, window_bounds = array<i64: 64, 128>}, {transform_indices = @transform_1, window_bounds = array<i64: 128, 256>}, {transform_indices = @transform_2, window_bounds = array<i64: 64, 256>}]} {
    %c0_i32 = arith.constant 0 : i32
    %0 = arith.cmpi eq, %arg1, %c0_i32 : i32
    %1 = arith.extui %0 : i1 to i32
    %c0_i32_0 = arith.constant 0 : i32
    %2 = arith.cmpi ne, %1, %c0_i32_0 : i32
    scf.if %2 {
      %cst_10 = arith.constant 0.000000e+00 : f32
      %12 = vector.broadcast %cst_10 : f32 to vector<64x256xf32>
      %c0_11 = arith.constant 0 : index
      %c0_12 = arith.constant 0 : index
      %13 = vector.load %arg5[%c0_11, %c0_12] : memref<64x256xf32, #tpu.memory_space<vmem>>, vector<64x256xf32>
      tpu.vector_store %arg5[%c0_11, %c0_12], %12 {strides = array<i32>} : memref<64x256xf32, #tpu.memory_space<vmem>>, vector<64x256xf32>,
    } else {
    }
    %c0 = arith.constant 0 : index
    %c0_1 = arith.constant 0 : index
    %3 = vector.load %arg5[%c0, %c0_1] : memref<64x256xf32, #tpu.memory_space<vmem>>, vector<64x256xf32>
    %c0_2 = arith.constant 0 : index
    %c0_3 = arith.constant 0 : index
    %4 = vector.load %arg2[%c0_2, %c0_3] : memref<64x128xf32, #tpu.memory_space<vmem>>, vector<64x128xf32>
    %c0_4 = arith.constant 0 : index
    %c0_5 = arith.constant 0 : index
    %5 = vector.load %arg3[%c0_4, %c0_5] : memref<128x256xf32, #tpu.memory_space<vmem>>, vector<128x256xf32>
    %cst = arith.constant dense<0.000000e+00> : vector<64x256xf32>
    %6 = tpu.matmul %4, %5, %cst {dimension_numbers = #tpu.dot_dimension_numbers<[1], [0], [0], [1], [0, 0, 1, 1], [], []>} : vector<64x128xf32>, vector<128x256xf32>, vector<64x256xf32> -> vector<64x256xf32>
    %7 = arith.addf %3, %6 : vector<64x256xf32>
    %c0_6 = arith.constant 0 : index
    %c0_7 = arith.constant 0 : index
    %8 = vector.load %arg5[%c0_6, %c0_7] : memref<64x256xf32, #tpu.memory_space<vmem>>, vector<64x256xf32>
    tpu.vector_store %arg5[%c0_6, %c0_7], %7 {strides = array<i32>} : memref<64x256xf32, #tpu.memory_space<vmem>>, vector<64x256xf32>,
    %c0_i32_8 = arith.constant 0 : i32
    %9 = arith.cmpi eq, %arg1, %c0_i32_8 : i32
    %10 = arith.extui %9 : i1 to i32
    %c0_i32_9 = arith.constant 0 : i32
    %11 = arith.cmpi ne, %10, %c0_i32_9 : i32
    scf.if %11 {
      %c0_10 = arith.constant 0 : index
      %c0_11 = arith.constant 0 : index
      %12 = vector.load %arg5[%c0_10, %c0_11] : memref<64x256xf32, #tpu.memory_space<vmem>>, vector<64x256xf32>
      %c0_12 = arith.constant 0 : index
      %c0_13 = arith.constant 0 : index
      %13 = vector.load %arg4[%c0_12, %c0_13] : memref<64x256xf32, #tpu.memory_space<vmem>>, vector<64x256xf32>
      tpu.vector_store %arg4[%c0_12, %c0_13], %12 {strides = array<i32>} : memref<64x256xf32, #tpu.memory_space<vmem>>, vector<64x256xf32>,
    } else {
    }
    return
  }
  func.func @transform_0(%arg0: i32, %arg1: i32) -> (i32, i32) {
    %c0_i32 = arith.constant 0 : i32
    return %arg0, %arg1 : i32, i32
  }
  func.func @transform_1(%arg0: i32, %arg1: i32) -> (i32, i32) {
    %c0_i32 = arith.constant 0 : i32
    %c0_i32_0 = arith.constant 0 : i32
    return %arg1, %c0_i32 : i32, i32
  }
  func.func @transform_2(%arg0: i32, %arg1: i32) -> (i32, i32) {
    %c0_i32 = arith.constant 0 : i32
    %c0_i32_0 = arith.constant 0 : i32
    return %arg0, %c0_i32 : i32, i32
  }
}

</mosaic_0001>

<bundles_post_ra>
// kernel: gae_graphconv.3
= control target key start
LH: loop header
LB: loop body
LE: loop exit
PB: predicated region body
PF: predicated region fallthrough
CT: control target
= control target key end

     0   :  { %s945_s21 = smov 0   ;;  %s947_s22 = smov 0   ;;  %s1157_s0 = inlined_call_operand.vmem [shape: f32[128,128], index: 0, kind: input, shape index: {}]   ;;  %s1158_s1 = inlined_call_operand.vmem [shape: f32[128,256], index: 1, kind: input, shape index: {}, may-alias: {1,2}]   ;;  %s1159_s2 = inlined_call_operand.vmem [shape: f32[128,256], index: 2, kind: input, shape index: {}, may-alias: {1,2}]   ;;  %s1160_s3 = inlined_call_operand.vmem [shape: f32[1,128], index: 3, kind: input, shape index: {}]   ;;  %s1161_s4 = inlined_call_operand.vmem [shape: f32[128,128], index: 4, kind: input, shape index: {}]   ;;  %s1162_s5 = inlined_call_operand.vmem [shape: f32[1,128], index: 5, kind: input, shape index: {}]   ;;  %s1163_s6 = inlined_call_operand.vmem [shape: f32[128,128], index: 6, kind: output, shape index: {}]  }
   0x1   :  { %s949_s23 = smov 0   ;;  %s951_s24 = smov 0  }
   0x2   :  { %s953_s25 = smov 0  }
   0x3 LB: > { %s771_s26 = sadd.s32 4294967295, %s908_s25   ;;  %s28_s27 = sadd.s32 1, %s904_s24  ;;  %s908_s25 = sphi %s953_s25, %s16_s25   ;;  %s904_s24 = sphi %s951_s24, %s1169_s24   ;;  %s900_s23 = sphi %s949_s23, %s1168_s23   ;;  %s896_s22 = sphi %s947_s22, %s1167_s22   ;;  %s892_s21 = sphi %s945_s21, %s1166_s21  }
   0x4   : > { %p30_p0 = scmp.ge.s32.totalorder %s28_s27, 2  ;;  %s84_s28 = sadd.s32 1, %s896_s22 }
   0x5   : > { %p91_p1 = scmp.ne.s32.totalorder %s896_s22, %s892_s21  ;;  %p92_p2 = scmp.eq.s32.totalorder %s908_s25, 0 }
   0x6   : > { %s1171_s27 = smov (%p30_p0, %s28_s27), 0  ;;  %p773_p4 = scmp.ge.s32.totalorder %s908_s25, 1 }
   0x7   : > { %p978_p3 = por %p92_p2, %p91_p1  ;;  %s81_s30 = ssub.s32 %s904_s24, %s1171_s27 }
   0x8   : > { %p197_p5 = scmp.lt.s32.totalorder %s908_s25, 3  ;;  %p82_p6 = scmp.eq.s32.totalorder %s81_s30, 0 }
   0xa   : > { %p986_p7 = pnand %p773_p4, %p197_p5 }
   0xb   : > { %s991_s8 = scalar_select %p82_p6, %s896_s22, %s84_s28  }
   0xc   : > { %201 = sbr.rel (%p986_p7) target bundleno = 39 (0x27), region = 12  ;;  %p774_p8 = scmp.ne.s32.totalorder (!%p986_p7), %s771_s26, 0 }
  0x11   : > { %205 = sbr.rel (%p774_p8) target bundleno = 39 (0x27), region = 16 }
  0x16   : > { %v264_v0 = vld [vmem:[%s1158_s1] sm:$0xff]  ;;  %v266_v1 = vld [vmem:[%s1158_s1 + $0x10] sm:$0xff] }
  0x17   : > { %v268_v2 = vld [vmem:[%s1158_s1 + $0x20] sm:$0xff]  ;;  %265 = vst [vmem:[#allocation3 + $0x30] sm:$0xff] %v264_v0  ;;  %v270_v3 = vld [vmem:[%s1158_s1 + $0x30] sm:$0xff] }
  0x18   : > { %267 = vst [vmem:[#allocation3] sm:$0xff] %v266_v1  ;;  %v272_v4 = vld [vmem:[%s1158_s1 + $0x40] sm:$0xff]  ;;  %v274_v5 = vld [vmem:[%s1158_s1 + $0x50] sm:$0xff] }
  0x19   : > { %269 = vst [vmem:[#allocation3 + $0x58] sm:$0xff] %v268_v2  ;;  %v276_v6 = vld [vmem:[%s1158_s1 + $0x60] sm:$0xff]  ;;  %v278_v7 = vld [vmem:[%s1158_s1 + $0x70] sm:$0xff] }
  0x1a   : > { %271 = vst [vmem:[#allocation3 + $0x18] sm:$0xff] %v270_v3  ;;  %v280_v8 = vld [vmem:[%s1158_s1 + $0x80] sm:$0xff]  ;;  %v282_v9 = vld [vmem:[%s1158_s1 + $0x90] sm:$0xff] }
  0x1b   : > { %273 = vst [vmem:[#allocation3 + $0x50] sm:$0xff] %v272_v4  ;;  %v284_v10 = vld [vmem:[%s1158_s1 + $0xa0] sm:$0xff]  ;;  %v286_v11 = vld [vmem:[%s1158_s1 + $0xb0] sm:$0xff] }
  0x1c   : > { %275 = vst [vmem:[#allocation3 + $0x68] sm:$0xff] %v274_v5  ;;  %v288_v12 = vld [vmem:[%s1158_s1 + $0xc0] sm:$0xff]  ;;  %v290_v13 = vld [vmem:[%s1158_s1 + $0xd0] sm:$0xff] }
  0x1d   : > { %277 = vst [vmem:[#allocation3 + $0x8] sm:$0xff] %v276_v6  ;;  %v292_v14 = vld [vmem:[%s1158_s1 + $0xe0] sm:$0xff]  ;;  %v294_v15 = vld [vmem:[%s1158_s1 + $0xf0] sm:$0xff] }
  0x1e   : > { %279 = vst [vmem:[#allocation3 + $0x48] sm:$0xff] %v278_v7 }
  0x1f   : > { %281 = vst [vmem:[#allocation3 + $0x40] sm:$0xff] %v280_v8 }
  0x20   : > { %283 = vst [vmem:[#allocation3 + $0x20] sm:$0xff] %v282_v9 }
  0x21   : > { %285 = vst [vmem:[#allocation3 + $0x10] sm:$0xff] %v284_v10 }
  0x22   : > { %287 = vst [vmem:[#allocation3 + $0x38] sm:$0xff] %v286_v11 }
  0x23   : > { %289 = vst [vmem:[#allocation3 + $0x60] sm:$0xff] %v288_v12 }
  0x24   : > { %291 = vst [vmem:[#allocation3 + $0x70] sm:$0xff] %v290_v13 }
  0x25   : > { %293 = vst [vmem:[#allocation3 + $0x78] sm:$0xff] %v292_v14 }
  0x26   : > { %295 = vst [vmem:[#allocation3 + $0x28] sm:$0xff] %v294_v15 }
  0x27 PF: > { %p775_p9 = scmp.ge.s32.totalorder %s908_s25, 2 }
  0x29   : > { %311 = sbr.rel (%p775_p9) target bundleno = 58 (0x3a), region = 66 }
  0x2e   : > { %326 = sbr.rel (!%p978_p3) target bundleno = 58 (0x3a), region = 74  ;;  %s328_s11 = sand.u32 (%p978_p3), 1, %s896_s22  }
  0x2f   : > { %s795_s12 = sshll.u32 (%p978_p3), %s904_s24, 7  ;;  %s776_s13 = sshll.u32 (%p978_p3), %s328_s11, 6 }
  0x30   : > { %s699_s16 = scalar_lea.vmem (%p978_p3), %s1159_s2, %s795_s12  ;;  %s330_s17 = scalar_lea.vmem (%p978_p3), [#allocation4], %s776_s13 }
  0x31   : > { %v779_v16 = vld [vmem:[%s699_s16 + $0x8] sm:$0xff] (%p978_p3)  ;;  %v780_v17 = vld [vmem:[%s699_s16 + $0x18] sm:$0xff] (%p978_p3) }
  0x32   : > { %v781_v18 = vld [vmem:[%s699_s16 + $0x28] sm:$0xff] (%p978_p3)  ;;  %379 = vst [vmem:[%s330_s17] sm:$0xff] (%p978_p3), %v779_v16  ;;  %v782_v19 = vld [vmem:[%s699_s16 + $0x38] sm:$0xff] (%p978_p3) }
  0x33   : > { %381 = vst [vmem:[%s330_s17 + $0x8] sm:$0xff] %v780_v17  ;;  %v783_v20 = vld [vmem:[%s699_s16 + $0x48] sm:$0xff]  ;;  %v784_v21 = vld [vmem:[%s699_s16 + $0x58] sm:$0xff] }
  0x34   : > { %383 = vst [vmem:[%s330_s17 + $0x10] sm:$0xff] %v781_v18  ;;  %v785_v22 = vld [vmem:[%s699_s16 + $0x68] sm:$0xff]  ;;  %v786_v23 = vld [vmem:[%s699_s16 + $0x78] sm:$0xff] }
  0x35   : > { %385 = vst [vmem:[%s330_s17 + $0x18] sm:$0xff] %v782_v19 }
  0x36   : > { %387 = vst [vmem:[%s330_s17 + $0x20] sm:$0xff] %v783_v20 }
  0x37   : > { %389 = vst [vmem:[%s330_s17 + $0x28] sm:$0xff] %v784_v21 }
  0x38   : > { %391 = vst [vmem:[%s330_s17 + $0x30] sm:$0xff] %v785_v22 }
  0x39   : > { %393 = vst [vmem:[%s330_s17 + $0x38] sm:$0xff] %v786_v23 }
  0x3a PF: > { %402 = sbr.rel (%p986_p7) target bundleno = 390 (0x186), region = 112  ;;  %s789_s29 = sshll.u32 (!%p986_p7), %s900_s23, 3 }
  0x3b   : > { %p446_p10 = scmp.lt.s32.totalorder (!%p986_p7), %s789_s29, 15 }
  0x3f   : > { %v508_v24 = vld [vmem:[#allocation3 + $0x28] sm:$0xff]  ;;  %v507_v25 = vld [vmem:[#allocation3 + $0x78] sm:$0xff]  ;;  %v506_v26 = vld [vmem:[#allocation3 + $0x70] sm:$0xff]  ;;  %s1173_s29 = smov (!%p446_p10, %s789_s29), 15 }
  0x40   : > { %796 = vmatpush.msra.mxu2 %v508_v24  ;;  %525 = vmatpush.msra.mxu0 %v508_v24  ;;  %v505_v27 = vld [vmem:[#allocation3 + $0x60] sm:$0xff]  ;;  %v504_v28 = vld [vmem:[#allocation3 + $0x38] sm:$0xff]  ;;  %v503_v29 = vld [vmem:[#allocation3 + $0x10] sm:$0xff]  ;;  %s790_s23 = sshll.u32 %s1173_s29, 3 }
  0x41   : > { %v502_v30 = vld [vmem:[#allocation3 + $0x20] sm:$0xff]  ;;  %v500_v32 = vld [vmem:[#allocation3 + $0x48] sm:$0xff]  ;;  %v497_v35 = vld [vmem:[#allocation3 + $0x50] sm:$0xff]  ;;  %s1068_s30 = scalar_lea.vmem %s1157_s0, %s790_s23  ;;  %s459_s14 = scalar_lea.vmem %s1163_s6, %s790_s23 }
  0x42   : > { %797 = vmatpush.msra.mxu2 %v507_v25  ;;  %526 = vmatpush.msra.mxu0 %v507_v25  ;;  %v501_v31 = vld [vmem:[#allocation3 + $0x40] sm:$0xff]  ;;  %v499_v33 = vld [vmem:[#allocation3 + $0x8] sm:$0xff]  ;;  %v496_v36 = vld [vmem:[#allocation3 + $0x18] sm:$0xff] }
  0x43   : > { %v498_v34 = vld [vmem:[#allocation3 + $0x68] sm:$0xff]  ;;  %v495_v37 = vld [vmem:[#allocation3 + $0x58] sm:$0xff]  ;;  %v615_v39 = vld [vmem:[%s1161_s4 + $0x70] sm:$0xff] }
  0x44   : > { %798 = vmatpush.msra.mxu2 %v506_v26  ;;  %527 = vmatpush.msra.mxu0 %v506_v26  ;;  %v616_v38 = vld [vmem:[%s1161_s4 + $0x78] sm:$0xff]  ;;  %v494_v40 = vld [vmem:[#allocation3] sm:$0xff]  ;;  %v614_v41 = vld [vmem:[%s1161_s4 + $0x68] sm:$0xff] }
  0x45   : > { %812 = vmatpush.msra.mxu3 %v616_v38  ;;  %621 = vmatpush.msra.mxu1 %v616_v38  ;;  %v493_v42 = vld [vmem:[#allocation3 + $0x30] sm:$0xff]  ;;  %v521_v43 = vld [vmem:[%s1068_s30 + $0x20] sm:$0xff]  ;;  %v612_v46 = vld [vmem:[%s1161_s4 + $0x58] sm:$0xff] }
  0x46   : > { %799 = vmatpush.msra.mxu2 %v505_v27  ;;  %528 = vmatpush.msra.mxu0 %v505_v27  ;;  %v517_v44 = vld [vmem:[%s1068_s30] sm:$0xff]  ;;  %v611_v47 = vld [vmem:[%s1161_s4 + $0x50] sm:$0xff]  ;;  %v610_v48 = vld [vmem:[%s1161_s4 + $0x48] sm:$0xff] }
  0x47   : > { %813 = vmatpush.msra.mxu3 %v615_v39  ;;  %622 = vmatpush.msra.mxu1 %v615_v39  ;;  %v613_v45 = vld [vmem:[%s1161_s4 + $0x60] sm:$0xff]  ;;  %v522_v49 = vld [vmem:[%s1068_s30 + $0x28] sm:$0xff]  ;;  %v608_v52 = vld [vmem:[%s1161_s4 + $0x38] sm:$0xff] }
  0x48   : > { %800 = vmatpush.msra.mxu2 %v504_v28  ;;  %529 = vmatpush.msra.mxu0 %v504_v28  ;;  %v518_v50 = vld [vmem:[%s1068_s30 + $0x8] sm:$0xff]  ;;  %v609_v51 = vld [vmem:[%s1161_s4 + $0x40] sm:$0xff]  ;;  %v607_v53 = vld [vmem:[%s1161_s4 + $0x30] sm:$0xff] }
  0x49   : > { %814 = vmatpush.msra.mxu3 %v614_v41  ;;  %623 = vmatpush.msra.mxu1 %v614_v41  ;;  %v606_v54 = vld [vmem:[%s1161_s4 + $0x28] sm:$0xff]  ;;  %v523_v55 = vld [vmem:[%s1068_s30 + $0x30] sm:$0xff]  ;;  %v605_v57 = vld [vmem:[%s1161_s4 + $0x20] sm:$0xff] }
  0x4a   : > { %801 = vmatpush.msra.mxu2 %v503_v29  ;;  %530 = vmatpush.msra.mxu0 %v503_v29  ;;  %v519_v56 = vld [vmem:[%s1068_s30 + $0x10] sm:$0xff]  ;;  %v604_v58 = vld [vmem:[%s1161_s4 + $0x18] sm:$0xff]  ;;  %v602_v62 = vld [vmem:[%s1161_s4 + $0x8] sm:$0xff] }
  0x4b   : > { %815 = vmatpush.msra.mxu3 %v613_v45  ;;  %624 = vmatpush.msra.mxu1 %v613_v45  ;;  %v524_v59 = vld [vmem:[%s1068_s30 + $0x38] sm:$0xff]  ;;  %v603_v61 = vld [vmem:[%s1161_s4 + $0x10] sm:$0xff]  ;;  %v601_v63 = vld [vmem:[%s1161_s4] sm:$0xff] }
  0x4c   : > { %802 = vmatpush.msra.mxu2 %v502_v30  ;;  %531 = vmatpush.msra.mxu0 %v502_v30  ;;  %v520_v60 = vld [vmem:[%s1068_s30 + $0x18] sm:$0xff]  ;;  %s408_s30 = sand.u32 1, %s892_s21   ;;  %v868_v1 = vld [vmem:[%s1160_s3] ss:$0 sm:$0xff] }
  0x4d   : > { %816 = vmatpush.msra.mxu3 %v612_v46  ;;  %625 = vmatpush.msra.mxu1 %v612_v46  ;;  %s788_s26 = sshll.u32 %s408_s30, 6  ;;  %v869_v41 = vld [vmem:[%s1162_s5] ss:$0 sm:$0xff] }
  0x4e   : > { %803 = vmatpush.msra.mxu2 %v501_v31  ;;  %532 = vmatpush.msra.mxu0 %v501_v31  ;;  %s1121_s28 = scalar_lea.vmem [#allocation4], %s788_s26 }
  0x4f   : > { %817 = vmatpush.msra.mxu3 %v611_v47  ;;  %626 = vmatpush.msra.mxu1 %v611_v47  ;;  %v465_v0 = vld [vmem:[%s1121_s28] sm:$0xff]  ;;  %v466_v6 = vld [vmem:[%s1121_s28 + $0x8] sm:$0xff]  ;;  %v467_v16 = vld [vmem:[%s1121_s28 + $0x10] sm:$0xff] }
  0x50   : > { %804 = vmatpush.msra.mxu2 %v500_v32  ;;  %533 = vmatpush.msra.mxu0 %v500_v32  ;;  %v477_v2 = vadd.f32 %v868_v1, %v465_v0  ;;  %v469_v3 = vld [vmem:[%s1121_s28 + $0x20] sm:$0xff]  ;;  %v478_v9 = vadd.f32 %v868_v1, %v466_v6  ;;  %v470_v12 = vld [vmem:[%s1121_s28 + $0x28] sm:$0xff]  ;;  %v479_v19 = vadd.f32 %v868_v1, %v467_v16  ;;  %v471_v22 = vld [vmem:[%s1121_s28 + $0x30] sm:$0xff] }
  0x51   : > { %818 = vmatpush.msra.mxu3 %v610_v48  ;;  %627 = vmatpush.msra.mxu1 %v610_v48  ;;  %v481_v7 = vadd.f32 %v868_v1, %v469_v3  ;;  %v482_v17 = vadd.f32 %v868_v1, %v470_v12  ;;  %v468_v26 = vld [vmem:[%s1121_s28 + $0x18] sm:$0xff]  ;;  %v483_v27 = vadd.f32 %v868_v1, %v471_v22 }
  0x52   : > { %805 = vmatpush.msra.mxu2 %v499_v33  ;;  %534 = vmatpush.msra.mxu0 %v499_v33  ;;  %v480_v29 = vadd.f32 %v868_v1, %v468_v26  ;;  %v472_v32 = vld [vmem:[%s1121_s28 + $0x38] sm:$0xff] }
  0x53   : > { %819 = vmatpush.msra.mxu3 %v609_v51  ;;  %628 = vmatpush.msra.mxu1 %v609_v51 }
  0x54   : > { %806 = vmatpush.msra.mxu2 %v498_v34  ;;  %535 = vmatpush.msra.mxu0 %v498_v34 }
  0x55   : > { %820 = vmatpush.msra.mxu3 %v608_v52  ;;  %629 = vmatpush.msra.mxu1 %v608_v52 }
  0x56   : > { %807 = vmatpush.msra.mxu2 %v497_v35  ;;  %536 = vmatpush.msra.mxu0 %v497_v35 }
  0x57   : > { %821 = vmatpush.msra.mxu3 %v607_v53  ;;  %630 = vmatpush.msra.mxu1 %v607_v53 }
  0x58   : > { %808 = vmatpush.msra.mxu2 %v496_v36  ;;  %537 = vmatpush.msra.mxu0 %v496_v36  ;;  %v484_v36 = vadd.f32 %v868_v1, %v472_v32 }
  0x59   : > { %822 = vmatpush.msra.mxu3 %v606_v54  ;;  %631 = vmatpush.msra.mxu1 %v606_v54 }
  0x5a   : > { %809 = vmatpush.msra.mxu2 %v495_v37  ;;  %538 = vmatpush.msra.mxu0 %v495_v37 }
  0x5b   : > { %823 = vmatpush.msra.mxu3 %v605_v57  ;;  %632 = vmatpush.msra.mxu1 %v605_v57 }
  0x5c   : > { %810 = vmatpush.msra.mxu2 %v494_v40  ;;  %539 = vmatpush.msra.mxu0 %v494_v40 }
  0x5d   : > { %824 = vmatpush.msra.mxu3 %v604_v58  ;;  %633 = vmatpush.msra.mxu1 %v604_v58 }
  0x5e   : > { %811 = vmatpush.msra.mxu2 %v493_v42  ;;  %540 = vmatpush.msra.mxu0 %v493_v42 }
  0x5f   : > { %553 = vmatmul.f32.vlgmr.msra.gmra.mxu2 %v521_v43  ;;  %541 = vmatmul.f32.vlgmr.msra.gmra.mxu0 %v517_v44 }
  0x60   : > { %825 = vmatpush.msra.mxu3 %v603_v61  ;;  %634 = vmatpush.msra.mxu1 %v603_v61 }
  0x62   : > { %826 = vmatpush.msra.mxu3 %v602_v62  ;;  %635 = vmatpush.msra.mxu1 %v602_v62 }
  0x64   : > { %827 = vmatpush.msra.mxu3 %v601_v63  ;;  %636 = vmatpush.msra.mxu1 %v601_v63 }
  0x67   : > { %556 = vmatmul.f32.gmra.mxu2 %v522_v49  ;;  %544 = vmatmul.f32.gmra.mxu0 %v518_v50 }
  0x6f   : > { %559 = vmatmul.f32.gmra.mxu2 %v523_v55  ;;  %547 = vmatmul.f32.gmra.mxu0 %v519_v56 }
  0x77   : > { %562 = vmatmul.f32.gmra.mxu2 %v524_v59  ;;  %550 = vmatmul.f32.gmra.mxu0 %v520_v60 }
  0xdc   : > { %v542_v4 = vpop.f32.mrf.mxu0 }
  0xdd   : > { %v566_v5 = vadd.f32 %v542_v4, %v477_v2 }
  0xdf   : > { %v593_v8 = vmax.f32 %v566_v5, 0.0 }
  0xe1   : > { %637 = vmatmul.f32.vlgmr.msra.gmra.mxu1 %v593_v8 }
  0xe2   : > { %v554_v10 = vpop.f32.mrf.mxu2 }
  0xe3   : > { %v570_v11 = vadd.f32 %v554_v10, %v481_v7 }
  0xe4   : > { %v545_v13 = vpop.f32.mrf.mxu0 }
  0xe5   : > { %v597_v14 = vmax.f32 %v570_v11, 0.0  ;;  %v567_v15 = vadd.f32 %v545_v13, %v478_v9 }
  0xe7   : > { %649 = vmatmul.f32.vlgmr.msra.gmra.mxu3 %v597_v14  ;;  %v594_v18 = vmax.f32 %v567_v15, 0.0 }
  0xe9   : > { %640 = vmatmul.f32.gmra.mxu1 %v594_v18 }
  0xea   : > { %v557_v20 = vpop.f32.mrf.mxu2 }
  0xeb   : > { %v571_v21 = vadd.f32 %v557_v20, %v482_v17 }
  0xec   : > { %v548_v23 = vpop.f32.mrf.mxu0 }
  0xed   : > { %v598_v24 = vmax.f32 %v571_v21, 0.0  ;;  %v568_v25 = vadd.f32 %v548_v23, %v479_v19 }
  0xef   : > { %652 = vmatmul.f32.gmra.mxu3 %v598_v24  ;;  %v595_v28 = vmax.f32 %v568_v25, 0.0 }
  0xf1   : > { %643 = vmatmul.f32.gmra.mxu1 %v595_v28 }
  0xf2   : > { %v560_v30 = vpop.f32.mrf.mxu2 }
  0xf3   : > { %v572_v31 = vadd.f32 %v560_v30, %v483_v27 }
  0xf4   : > { %v551_v33 = vpop.f32.mrf.mxu0 }
  0xf5   : > { %v599_v34 = vmax.f32 %v572_v31, 0.0  ;;  %v569_v35 = vadd.f32 %v551_v33, %v480_v29 }
  0xf7   : > { %655 = vmatmul.f32.gmra.mxu3 %v599_v34  ;;  %v596_v37 = vmax.f32 %v569_v35, 0.0 }
  0xf9   : > { %646 = vmatmul.f32.gmra.mxu1 %v596_v37 }
  0xfa   : > { %v563_v38 = vpop.f32.mrf.mxu2 }
  0xfb   : > { %v573_v39 = vadd.f32 %v563_v38, %v484_v36 }
  0xfd   : > { %v600_v40 = vmax.f32 %v573_v39, 0.0 }
  0xff   : > { %658 = vmatmul.f32.gmra.mxu3 %v600_v40 }
 0x15e   : > { %v638_v42 = vpop.f32.mrf.mxu1 }
 0x15f   : > { %v639_v43 = vadd.f32 %v869_v41, %v638_v42 }
 0x161   : > { %662 = vst [vmem:[%s459_s14] sm:$0xff] %v639_v43 }
 0x166   : > { %v641_v44 = vpop.f32.mrf.mxu1 }
 0x167   : > { %v642_v45 = vadd.f32 %v869_v41, %v641_v44 }
 0x169   : > { %663 = vst [vmem:[%s459_s14 + $0x8] sm:$0xff] %v642_v45 }
 0x16a   : > { %v650_v46 = vpop.f32.mrf.mxu3 }
 0x16b   : > { %v651_v47 = vadd.f32 %v869_v41, %v650_v46 }
 0x16d   : > { %666 = vst [vmem:[%s459_s14 + $0x20] sm:$0xff] %v651_v47 }
 0x16e   : > { %v644_v48 = vpop.f32.mrf.mxu1 }
 0x16f   : > { %v645_v49 = vadd.f32 %v869_v41, %v644_v48 }
 0x171   : > { %664 = vst [vmem:[%s459_s14 + $0x10] sm:$0xff] %v645_v49 }
 0x172   : > { %v653_v50 = vpop.f32.mrf.mxu3 }
 0x173   : > { %v654_v51 = vadd.f32 %v869_v41, %v653_v50 }
 0x175   : > { %667 = vst [vmem:[%s459_s14 + $0x28] sm:$0xff] %v654_v51 }
 0x176   : > { %v647_v52 = vpop.f32.mrf.mxu1 }
 0x177   : > { %v648_v53 = vadd.f32 %v869_v41, %v647_v52 }
 0x179   : > { %665 = vst [vmem:[%s459_s14 + $0x18] sm:$0xff] %v648_v53 }
 0x17a   : > { %v656_v54 = vpop.f32.mrf.mxu3 }
 0x17b   : > { %v657_v55 = vadd.f32 %v869_v41, %v656_v54 }
 0x17d   : > { %668 = vst [vmem:[%s459_s14 + $0x30] sm:$0xff] %v657_v55 }
 0x182   : > { %v659_v56 = vpop.f32.mrf.mxu3 }
 0x183   : > { %v660_v57 = vadd.f32 %v869_v41, %v659_v56 }
 0x185   : > { %669 = vst [vmem:[%s459_s14 + $0x38] sm:$0xff] %v660_v57 }
 0x186 PF: > { %s16_s25 = sadd.s32 1, %s908_s25   ;;  %s1166_s21 = smov %s896_s22 }
 0x187   : > { %p13_p11 = scmp.ge.s32.totalorder %s16_s25, 4   ;;  %s1167_s22 = smov %s991_s8 }
 0x188   : > { %s1168_s23 = smov %s904_s24  ;;  %s1169_s24 = smov %s1171_s27 }
 0x189   :  { %15 = sbr.rel (!%p13_p11) target bundleno = 3 (0x3), region = 170 }

// kernel: gae_graphconv.2
= control target key start
LH: loop header
LB: loop body
LE: loop exit
PB: predicated region body
PF: predicated region fallthrough
CT: control target
= control target key end

     0   :  { %s616_s9 = smov 0   ;;  %s618_s10 = smov 0   ;;  %s780_s0 = inlined_call_operand.vmem [shape: f32[128,128], index: 0, kind: input, shape index: {}]   ;;  %s781_s1 = inlined_call_operand.vmem [shape: f32[128,256], index: 1, kind: input, shape index: {}]   ;;  %s782_s2 = inlined_call_operand.vmem [shape: f32[128,256], index: 2, kind: output, shape index: {}]  }
   0x1   :  { %s620_s11 = smov 0  }
   0x2 LB: > { %s24_s12 = sadd.s32 1, %s595_s10  ;;  %p512_p0 = scmp.ge.s32.totalorder %s599_s11, 1  ;;  %s599_s11 = sphi %s620_s11, %s12_s11   ;;  %s595_s10 = sphi %s618_s10, %s784_s10   ;;  %s591_s9 = sphi %s616_s9, %s783_s9  }
   0x3   : > { %p26_p1 = scmp.ge.s32.totalorder %s24_s12, 2  ;;  %p142_p2 = scmp.lt.s32.totalorder %s599_s11, 3 }
   0x5   : > { %s786_s12 = smov (%p26_p1, %s24_s12), 0  ;;  %p143_p3 = pnand %p512_p0, %p142_p2 }
   0x6   : > { %s513_s21 = sshll.u32 (!%p143_p3), %s591_s9, 3 }
   0x7   : > { %146 = sbr.rel (%p143_p3) target bundleno = 202 (0xca), region = 28  ;;  %p175_p4 = scmp.lt.s32.totalorder (!%p143_p3), %s513_s21, 15 }
   0xc   : > { %v271_v0 = vld [vmem:[%s781_s1 + $0xf0] sm:$0xff]  ;;  %v272_v1 = vld [vmem:[%s781_s1 + $0xf8] sm:$0xff]  ;;  %v269_v2 = vld [vmem:[%s781_s1 + $0xe0] sm:$0xff]  ;;  %s788_s21 = smov (!%p175_p4, %s513_s21), 15 }
   0xd   : > { %521 = vmatpush.msra.mxu2 %v271_v0  ;;  %537 = vmatpush.msra.mxu3 %v272_v1  ;;  %v270_v3 = vld [vmem:[%s781_s1 + $0xe8] sm:$0xff]  ;;  %v267_v4 = vld [vmem:[%s781_s1 + $0xd0] sm:$0xff]  ;;  %v268_v5 = vld [vmem:[%s781_s1 + $0xd8] sm:$0xff]  ;;  %s514_s17 = sshll.u32 %s788_s21, 3  ;;  %s520_s5 = sshll.u32 %s788_s21, 4 }
   0xe   : > { %273 = vmatpush.msra.mxu0 %v271_v0  ;;  %314 = vmatpush.msra.mxu1 %v272_v1  ;;  %v265_v6 = vld [vmem:[%s781_s1 + $0xc0] sm:$0xff]  ;;  %v266_v7 = vld [vmem:[%s781_s1 + $0xc8] sm:$0xff]  ;;  %v263_v8 = vld [vmem:[%s781_s1 + $0xb0] sm:$0xff]  ;;  %s733_s28 = scalar_lea.vmem %s780_s0, %s514_s17  ;;  %s753_s8 = scalar_lea.vmem %s782_s2, %s520_s5 }
   0xf   : > { %522 = vmatpush.msra.mxu2 %v269_v2  ;;  %538 = vmatpush.msra.mxu3 %v270_v3  ;;  %v264_v9 = vld [vmem:[%s781_s1 + $0xb8] sm:$0xff]  ;;  %v261_v10 = vld [vmem:[%s781_s1 + $0xa0] sm:$0xff]  ;;  %v262_v11 = vld [vmem:[%s781_s1 + $0xa8] sm:$0xff] }
  0x10   : > { %274 = vmatpush.msra.mxu0 %v269_v2  ;;  %315 = vmatpush.msra.mxu1 %v270_v3  ;;  %v259_v12 = vld [vmem:[%s781_s1 + $0x90] sm:$0xff]  ;;  %v260_v13 = vld [vmem:[%s781_s1 + $0x98] sm:$0xff]  ;;  %v257_v14 = vld [vmem:[%s781_s1 + $0x80] sm:$0xff] }
  0x11   : > { %523 = vmatpush.msra.mxu2 %v267_v4  ;;  %539 = vmatpush.msra.mxu3 %v268_v5  ;;  %v258_v15 = vld [vmem:[%s781_s1 + $0x88] sm:$0xff]  ;;  %v255_v16 = vld [vmem:[%s781_s1 + $0x70] sm:$0xff]  ;;  %v256_v17 = vld [vmem:[%s781_s1 + $0x78] sm:$0xff] }
  0x12   : > { %275 = vmatpush.msra.mxu0 %v267_v4  ;;  %316 = vmatpush.msra.mxu1 %v268_v5  ;;  %v253_v18 = vld [vmem:[%s781_s1 + $0x60] sm:$0xff]  ;;  %v254_v19 = vld [vmem:[%s781_s1 + $0x68] sm:$0xff]  ;;  %v251_v20 = vld [vmem:[%s781_s1 + $0x50] sm:$0xff] }
  0x13   : > { %524 = vmatpush.msra.mxu2 %v265_v6  ;;  %540 = vmatpush.msra.mxu3 %v266_v7  ;;  %v252_v21 = vld [vmem:[%s781_s1 + $0x58] sm:$0xff]  ;;  %v249_v22 = vld [vmem:[%s781_s1 + $0x40] sm:$0xff]  ;;  %v250_v23 = vld [vmem:[%s781_s1 + $0x48] sm:$0xff] }
  0x14   : > { %276 = vmatpush.msra.mxu0 %v265_v6  ;;  %317 = vmatpush.msra.mxu1 %v266_v7  ;;  %v247_v24 = vld [vmem:[%s781_s1 + $0x30] sm:$0xff]  ;;  %v248_v25 = vld [vmem:[%s781_s1 + $0x38] sm:$0xff]  ;;  %v245_v26 = vld [vmem:[%s781_s1 + $0x20] sm:$0xff] }
  0x15   : > { %525 = vmatpush.msra.mxu2 %v263_v8  ;;  %541 = vmatpush.msra.mxu3 %v264_v9  ;;  %v246_v27 = vld [vmem:[%s781_s1 + $0x28] sm:$0xff]  ;;  %v243_v28 = vld [vmem:[%s781_s1 + $0x10] sm:$0xff]  ;;  %v244_v29 = vld [vmem:[%s781_s1 + $0x18] sm:$0xff] }
  0x16   : > { %277 = vmatpush.msra.mxu0 %v263_v8  ;;  %318 = vmatpush.msra.mxu1 %v264_v9  ;;  %v241_v30 = vld [vmem:[%s781_s1] sm:$0xff]  ;;  %v242_v31 = vld [vmem:[%s781_s1 + $0x8] sm:$0xff]  ;;  %v239_v36 = vld [vmem:[%s733_s28 + $0x30] sm:$0xff] }
  0x17   : > { %526 = vmatpush.msra.mxu2 %v261_v10  ;;  %542 = vmatpush.msra.mxu3 %v262_v11  ;;  %v237_v32 = vld [vmem:[%s733_s28 + $0x20] sm:$0xff]  ;;  %v238_v34 = vld [vmem:[%s733_s28 + $0x28] sm:$0xff]  ;;  %v235_v37 = vld [vmem:[%s733_s28 + $0x10] sm:$0xff] }
  0x18   : > { %278 = vmatpush.msra.mxu0 %v261_v10  ;;  %319 = vmatpush.msra.mxu1 %v262_v11  ;;  %v233_v33 = vld [vmem:[%s733_s28] sm:$0xff]  ;;  %v234_v35 = vld [vmem:[%s733_s28 + $0x8] sm:$0xff]  ;;  %v240_v38 = vld [vmem:[%s733_s28 + $0x38] sm:$0xff] }
  0x19   : > { %527 = vmatpush.msra.mxu2 %v259_v12  ;;  %543 = vmatpush.msra.mxu3 %v260_v13  ;;  %v236_v39 = vld [vmem:[%s733_s28 + $0x18] sm:$0xff] }
  0x1a   : > { %279 = vmatpush.msra.mxu0 %v259_v12  ;;  %320 = vmatpush.msra.mxu1 %v260_v13 }
  0x1b   : > { %528 = vmatpush.msra.mxu2 %v257_v14  ;;  %544 = vmatpush.msra.mxu3 %v258_v15 }
  0x1c   : > { %280 = vmatpush.msra.mxu0 %v257_v14  ;;  %321 = vmatpush.msra.mxu1 %v258_v15 }
  0x1d   : > { %529 = vmatpush.msra.mxu2 %v255_v16  ;;  %545 = vmatpush.msra.mxu3 %v256_v17 }
  0x1e   : > { %281 = vmatpush.msra.mxu0 %v255_v16  ;;  %322 = vmatpush.msra.mxu1 %v256_v17 }
  0x1f   : > { %530 = vmatpush.msra.mxu2 %v253_v18  ;;  %546 = vmatpush.msra.mxu3 %v254_v19 }
  0x20   : > { %282 = vmatpush.msra.mxu0 %v253_v18  ;;  %323 = vmatpush.msra.mxu1 %v254_v19 }
  0x21   : > { %531 = vmatpush.msra.mxu2 %v251_v20  ;;  %547 = vmatpush.msra.mxu3 %v252_v21 }
  0x22   : > { %283 = vmatpush.msra.mxu0 %v251_v20  ;;  %324 = vmatpush.msra.mxu1 %v252_v21 }
  0x23   : > { %532 = vmatpush.msra.mxu2 %v249_v22  ;;  %548 = vmatpush.msra.mxu3 %v250_v23 }
  0x24   : > { %284 = vmatpush.msra.mxu0 %v249_v22  ;;  %325 = vmatpush.msra.mxu1 %v250_v23 }
  0x25   : > { %533 = vmatpush.msra.mxu2 %v247_v24  ;;  %549 = vmatpush.msra.mxu3 %v248_v25 }
  0x26   : > { %285 = vmatpush.msra.mxu0 %v247_v24  ;;  %326 = vmatpush.msra.mxu1 %v248_v25 }
  0x27   : > { %534 = vmatpush.msra.mxu2 %v245_v26  ;;  %550 = vmatpush.msra.mxu3 %v246_v27 }
  0x28   : > { %286 = vmatpush.msra.mxu0 %v245_v26  ;;  %327 = vmatpush.msra.mxu1 %v246_v27 }
  0x29   : > { %535 = vmatpush.msra.mxu2 %v243_v28  ;;  %551 = vmatpush.msra.mxu3 %v244_v29 }
  0x2a   : > { %287 = vmatpush.msra.mxu0 %v243_v28  ;;  %328 = vmatpush.msra.mxu1 %v244_v29 }
  0x2b   : > { %536 = vmatpush.msra.mxu2 %v241_v30  ;;  %552 = vmatpush.msra.mxu3 %v242_v31 }
  0x2c   : > { %301 = vmatmul.f32.vlgmr.msra.gmra.mxu2 %v237_v32  ;;  %342 = vmatmul.f32.vlgmr.msra.gmra.mxu3 %v237_v32 }
  0x2d   : > { %288 = vmatpush.msra.mxu0 %v241_v30  ;;  %329 = vmatpush.msra.mxu1 %v242_v31 }
  0x2e   : > { %289 = vmatmul.f32.vlgmr.msra.gmra.mxu0 %v233_v33  ;;  %330 = vmatmul.f32.vlgmr.msra.gmra.mxu1 %v233_v33 }
  0x34   : > { %304 = vmatmul.f32.gmra.mxu2 %v238_v34  ;;  %345 = vmatmul.f32.gmra.mxu3 %v238_v34 }
  0x36   : > { %292 = vmatmul.f32.gmra.mxu0 %v234_v35  ;;  %333 = vmatmul.f32.gmra.mxu1 %v234_v35 }
  0x3c   : > { %307 = vmatmul.f32.gmra.mxu2 %v239_v36  ;;  %348 = vmatmul.f32.gmra.mxu3 %v239_v36 }
  0x3e   : > { %295 = vmatmul.f32.gmra.mxu0 %v235_v37  ;;  %336 = vmatmul.f32.gmra.mxu1 %v235_v37 }
  0x44   : > { %310 = vmatmul.f32.gmra.mxu2 %v240_v38  ;;  %351 = vmatmul.f32.gmra.mxu3 %v240_v38 }
  0x46   : > { %298 = vmatmul.f32.gmra.mxu0 %v236_v39  ;;  %339 = vmatmul.f32.gmra.mxu1 %v236_v39 }
  0xab   : > { %v290_v40 = vpop.f32.mrf.mxu0  ;;  %v331_v41 = vpop.f32.mrf.mxu1 }
  0xac   : > { %406 = vst [vmem:[%s753_s8] sm:$0xff] %v290_v40 }
  0xad   : > { %407 = vst [vmem:[%s753_s8 + $0x8] sm:$0xff] %v331_v41 }
  0xaf   : > { %v302_v42 = vpop.f32.mrf.mxu2  ;;  %v343_v43 = vpop.f32.mrf.mxu3 }
  0xb0   : > { %414 = vst [vmem:[%s753_s8 + $0x40] sm:$0xff] %v302_v42 }
  0xb1   : > { %415 = vst [vmem:[%s753_s8 + $0x48] sm:$0xff] %v343_v43 }
  0xb3   : > { %v293_v44 = vpop.f32.mrf.mxu0  ;;  %v334_v45 = vpop.f32.mrf.mxu1 }
  0xb4   : > { %408 = vst [vmem:[%s753_s8 + $0x10] sm:$0xff] %v293_v44 }
  0xb5   : > { %409 = vst [vmem:[%s753_s8 + $0x18] sm:$0xff] %v334_v45 }
  0xb7   : > { %v305_v46 = vpop.f32.mrf.mxu2  ;;  %v346_v47 = vpop.f32.mrf.mxu3 }
  0xb8   : > { %416 = vst [vmem:[%s753_s8 + $0x50] sm:$0xff] %v305_v46 }
  0xb9   : > { %417 = vst [vmem:[%s753_s8 + $0x58] sm:$0xff] %v346_v47 }
  0xbb   : > { %v296_v48 = vpop.f32.mrf.mxu0  ;;  %v337_v49 = vpop.f32.mrf.mxu1 }
  0xbc   : > { %410 = vst [vmem:[%s753_s8 + $0x20] sm:$0xff] %v296_v48 }
  0xbd   : > { %411 = vst [vmem:[%s753_s8 + $0x28] sm:$0xff] %v337_v49 }
  0xbf   : > { %v308_v50 = vpop.f32.mrf.mxu2  ;;  %v349_v51 = vpop.f32.mrf.mxu3 }
  0xc0   : > { %418 = vst [vmem:[%s753_s8 + $0x60] sm:$0xff] %v308_v50 }
  0xc1   : > { %419 = vst [vmem:[%s753_s8 + $0x68] sm:$0xff] %v349_v51 }
  0xc3   : > { %v299_v52 = vpop.f32.mrf.mxu0  ;;  %v340_v53 = vpop.f32.mrf.mxu1 }
  0xc4   : > { %412 = vst [vmem:[%s753_s8 + $0x30] sm:$0xff] %v299_v52 }
  0xc5   : > { %413 = vst [vmem:[%s753_s8 + $0x38] sm:$0xff] %v340_v53 }
  0xc7   : > { %v311_v54 = vpop.f32.mrf.mxu2  ;;  %v352_v55 = vpop.f32.mrf.mxu3 }
  0xc8   : > { %420 = vst [vmem:[%s753_s8 + $0x70] sm:$0xff] %v311_v54 }
  0xc9   : > { %421 = vst [vmem:[%s753_s8 + $0x78] sm:$0xff] %v352_v55 }
  0xca PF: > { %s12_s11 = sadd.s32 1, %s599_s11   ;;  %s783_s9 = smov %s595_s10 }
  0xcb   : > { %p9_p5 = scmp.ge.s32.totalorder %s12_s11, 4   ;;  %s784_s10 = smov %s786_s12 }
  0xcd   :  { %11 = sbr.rel (!%p9_p5) target bundleno = 2 (0x2), region = 69 }

</bundles_post_ra>
